<compile_context>
chip_gen: v6e
topology: v6e:2x2x1
jax: 0.10.0
libtpu: 0.0.40
codegen_flags: <defaults>
</compile_context>

<pallas_src>
import jax
import jax.numpy as jnp
from jax.experimental import pallas as pl
from jax.experimental.pallas import tpu as pltpu


def _silu(x):
    return x * jax.nn.sigmoid(x)


def _layernorm(h, gamma, beta, eps=1e-5):
    # One-pass moments: var = E[h^2] - mu^2 (biased, matches PyTorch LayerNorm).
    mu = jnp.mean(h, axis=-1, keepdims=True)
    mean_sq = jnp.mean(h * h, axis=-1, keepdims=True)
    var = mean_sq - mu * mu
    return (h - mu) * jax.lax.rsqrt(var + eps) * gamma + beta


def projection_discriminator_kernel(
    x_ref,      # (TB, C)  bf16 input tile (x[..., 0, 0])
    w1_ref,     # (C, C)   bf16 Linear-1 weight, pre-transposed (in, out), resident
    w2_ref,     # (C, C)   bf16 Linear-2 weight, pre-transposed (in, out), resident
    vec_ref,    # (8, C)   f32 packed per-channel vectors, resident:
                #          rows 0..6 = b1, g1, be1, b2, g2, be2, w3 ; row 7 = pad
    b3_ref,     # (1, 1)   f32 final bias, SMEM scalar
    o_ref,      # (TB, 1)  f32 output tile
):
    b1, g1, be1 = vec_ref[0:1, :], vec_ref[1:2, :], vec_ref[2:3, :]
    b2, g2, be2 = vec_ref[3:4, :], vec_ref[4:5, :], vec_ref[5:6, :]
    w3 = vec_ref[6:7, :]
    b3 = b3_ref[0, 0]

    # --- block 1: Linear -> LayerNorm -> SiLU  (bf16 MXU, f32 accumulate) ---
    h = jnp.dot(x_ref[...], w1_ref[...], preferred_element_type=jnp.float32) + b1
    h = _silu(_layernorm(h, g1, be1))

    # --- block 2: Linear -> LayerNorm -> SiLU ---
    h = jnp.dot(h.astype(jnp.bfloat16), w2_ref[...],
                preferred_element_type=jnp.float32) + b2
    h = _silu(_layernorm(h, g2, be2))

    # --- final Linear(ch, 1): lane reduction (avoids a degenerate (C,1) matmul) ---
    out = jnp.sum(h * w3, axis=-1, keepdims=True) + b3
    o_ref[...] = out.astype(o_ref.dtype)


def _vmem_limit_bytes(TB, C):
    weights = 2 * (C * C * 2) * 2                    # two bf16 (C,C) weights (+slack)
    vectors = 2 * (8 * C * 4)                        # packed per-channel vectors
    act_io = 2 * (TB * C * 2) + 2 * (TB * 128 * 4)   # double-buffered in / padded out
    scratch = 8 * TB * C * 4                         # f32 intermediates headroom
    need = weights + vectors + act_io + scratch + (8 << 20)
    # Cap at 60 MiB so the budget stays legal on v7x (64 MiB physical VMEM).
    return int(min(60 << 20, max(32 << 20, need)))


def projection_discriminator(x, packed_params):
    """x: (B, C, H, W) float32 (NCHW). Returns (B, 1) float32."""
    w1_bf16, w2_bf16, vec, b3 = packed_params
    B, C = x.shape[0], x.shape[1]

    # Glue: take the (0, 0) spatial element (cheap strided slice) and cast the
    # matmul operand to bf16 before it ever hits HBM->VMEM DMA.
    # TODO(synk): fuse this slice into the BlockSpec via pl.Squeezed() trailing dims
    # once a (TB, C, 1, 1) block is layout-legal; kept in glue for the (8,128) rule.
    x_vec = x[:, :, 0, 0].astype(jnp.bfloat16)  # (B, C)

    # Batch tile: multiple of 8 sublanes, up to 256 rows per step.
    TB = 256 if B >= 256 else max(8, ((B + 7) // 8) * 8)
    grid = (pl.cdiv(B, TB),)

    kernel = pl.pallas_call(
        projection_discriminator_kernel,
        out_shape=jax.ShapeDtypeStruct((B, 1), jnp.float32),
        grid=grid,
        in_specs=[
            pl.BlockSpec((TB, C), lambda i: (i, 0)),     # x tile, pipelined over batch
            pl.BlockSpec((C, C), lambda i: (0, 0)),      # w1: resident
            pl.BlockSpec((C, C), lambda i: (0, 0)),      # w2: resident
            pl.BlockSpec((8, C), lambda i: (0, 0)),      # packed vectors: resident
            pl.BlockSpec(memory_space=pltpu.MemorySpace.SMEM),  # b3 scalar
        ],
        out_specs=pl.BlockSpec((TB, 1), lambda i: (i, 0)),
        compiler_params=pltpu.CompilerParams(
            dimension_semantics=("parallel",),
            vmem_limit_bytes=_vmem_limit_bytes(TB, C),
        ),
    )
    return kernel(x_vec, w1_bf16, w2_bf16, vec, b3)


def init_params(key, ch):
    """Deterministic synthetic parameters (shapes match nn.Linear / nn.LayerNorm).

    Linear weights are stored pre-transposed as (in, out); real PyTorch weights
    (out, in) would need a .T before pack_params.
    """
    ks = jax.random.split(key, 10)
    scale = 0.1
    w1 = scale * jax.random.normal(ks[0], (ch, ch), jnp.float32)
    b1 = scale * jax.random.normal(ks[1], (ch,), jnp.float32)
    g1 = 1.0 + scale * jax.random.normal(ks[2], (ch,), jnp.float32)
    be1 = scale * jax.random.normal(ks[3], (ch,), jnp.float32)
    w2 = scale * jax.random.normal(ks[4], (ch, ch), jnp.float32)
    b2 = scale * jax.random.normal(ks[5], (ch,), jnp.float32)
    g2 = 1.0 + scale * jax.random.normal(ks[6], (ch,), jnp.float32)
    be2 = scale * jax.random.normal(ks[7], (ch,), jnp.float32)
    w3 = scale * jax.random.normal(ks[8], (ch,), jnp.float32)   # Linear(ch, 1) weight
    b3 = scale * jax.random.normal(ks[9], (), jnp.float32)
    return (w1, b1, g1, be1, w2, b2, g2, be2, w3, b3)


def pack_params(params):
    """Convert f32 module params into the kernel's packed layout."""
    (w1, b1, g1, be1, w2, b2, g2, be2, w3, b3) = params
    C = w1.shape[0]
    vec = jnp.zeros((8, C), jnp.float32)
    vec = vec.at[0].set(b1).at[1].set(g1).at[2].set(be1)
    vec = vec.at[3].set(b2).at[4].set(g2).at[5].set(be2)
    vec = vec.at[6].set(w3)                                     # row 7 stays zero (pad)
    b3_arr = jnp.reshape(b3, (1, 1)).astype(jnp.float32)
    return (w1.astype(jnp.bfloat16), w2.astype(jnp.bfloat16), vec, b3_arr)


def reference_forward(x, params):
    """Pure-JAX reference matching the PyTorch semantics (bf16 matmul operands,
    f32 accumulation, same as the kernel)."""
    (w1, b1, g1, be1, w2, b2, g2, be2, w3, b3) = params
    bf = lambda a: a.astype(jnp.bfloat16)
    h = x[:, :, 0, 0]
    h = jnp.dot(bf(h), bf(w1), preferred_element_type=jnp.float32) + b1
    h = _silu(_layernorm(h, g1, be1))
    h = jnp.dot(bf(h), bf(w2), preferred_element_type=jnp.float32) + b2
    h = _silu(_layernorm(h, g2, be2))
    return jnp.sum(h * w3, axis=-1, keepdims=True) + b3


if __name__ == "__main__":
    key = jax.random.PRNGKey(0)
    k_x, k_p, k_xl = jax.random.split(key, 3)

    B, C, H, W = 2, 32, 16, 16
    x = jax.random.normal(k_x, (B, C, H, W), jnp.float32)
    params = init_params(k_p, C)
    packed = pack_params(params)

    out = jax.block_until_ready(projection_discriminator(x, packed))
    ref = reference_forward(x, params)
    assert out.shape == (B, 1), out.shape
    assert jnp.allclose(out, ref, atol=5e-3, rtol=5e-3), (out, ref)

    # Larger batch to exercise the batch grid / resident-weight pipelining path.
    B2 = 512
    x2 = jax.random.normal(k_xl, (B2, C, H, W), jnp.float32)
    out2 = jax.block_until_ready(projection_discriminator(x2, packed))
    ref2 = reference_forward(x2, params)
    assert out2.shape == (B2, 1), out2.shape
    assert jnp.allclose(out2, ref2, atol=5e-3, rtol=5e-3)

    print("KERNEL_OK")
</pallas_src>

<mosaic_0001>
module attributes {stable_mosaic.version = 11 : i64} {
  func.func @projection_discriminator_kernel(%arg0: i32, %arg1: memref<8x32xbf16, #tpu.memory_space<vmem>>, %arg2: memref<32x32xbf16, #tpu.memory_space<vmem>>, %arg3: memref<32x32xbf16, #tpu.memory_space<vmem>>, %arg4: memref<8x32xf32, #tpu.memory_space<vmem>>, %arg5: memref<1x1xf32, #tpu.memory_space<smem>>, %arg6: memref<8x1xf32, #tpu.memory_space<vmem>>) attributes {dimension_semantics = [#tpu.dimension_semantics<parallel>], iteration_bounds = array<i64: 1>, scalar_prefetch = 0 : i64, scratch_operands = 0 : i64, tpu.core_type = #tpu.core_type<tc>, window_params = [{transform_indices = @transform_0, window_bounds = array<i64: 8, 32>}, {pipeline_mode = #tpu.pipeline_mode<synchronous>, transform_indices = @transform_1, window_bounds = array<i64: 32, 32>}, {pipeline_mode = #tpu.pipeline_mode<synchronous>, transform_indices = @transform_2, window_bounds = array<i64: 32, 32>}, {pipeline_mode = #tpu.pipeline_mode<synchronous>, transform_indices = @transform_3, window_bounds = array<i64: 8, 32>}, {transform_indices = @transform_4, window_bounds = array<i64: 1, 1>}, {transform_indices = @transform_5, window_bounds = array<i64: 8, 1>}]} {
    %c0 = arith.constant 0 : index
    %c0_0 = arith.constant 0 : index
    %0 = vector.load %arg4[%c0, %c0_0] : memref<8x32xf32, #tpu.memory_space<vmem>>, vector<1x32xf32>
    %c1 = arith.constant 1 : index
    %c0_1 = arith.constant 0 : index
    %1 = vector.load %arg4[%c1, %c0_1] : memref<8x32xf32, #tpu.memory_space<vmem>>, vector<1x32xf32>
    %c2 = arith.constant 2 : index
    %c0_2 = arith.constant 0 : index
    %2 = vector.load %arg4[%c2, %c0_2] : memref<8x32xf32, #tpu.memory_space<vmem>>, vector<1x32xf32>
    %c3 = arith.constant 3 : index
    %c0_3 = arith.constant 0 : index
    %3 = vector.load %arg4[%c3, %c0_3] : memref<8x32xf32, #tpu.memory_space<vmem>>, vector<1x32xf32>
    %c4 = arith.constant 4 : index
    %c0_4 = arith.constant 0 : index
    %4 = vector.load %arg4[%c4, %c0_4] : memref<8x32xf32, #tpu.memory_space<vmem>>, vector<1x32xf32>
    %c5 = arith.constant 5 : index
    %c0_5 = arith.constant 0 : index
    %5 = vector.load %arg4[%c5, %c0_5] : memref<8x32xf32, #tpu.memory_space<vmem>>, vector<1x32xf32>
    %c6 = arith.constant 6 : index
    %c0_6 = arith.constant 0 : index
    %6 = vector.load %arg4[%c6, %c0_6] : memref<8x32xf32, #tpu.memory_space<vmem>>, vector<1x32xf32>
    %c0_7 = arith.constant 0 : index
    %c0_8 = arith.constant 0 : index
    %7 = memref.load %arg5[%c0_7, %c0_8] : memref<1x1xf32, #tpu.memory_space<smem>>
    %c0_9 = arith.constant 0 : index
    %c0_10 = arith.constant 0 : index
    %8 = vector.load %arg1[%c0_9, %c0_10] : memref<8x32xbf16, #tpu.memory_space<vmem>>, vector<8x32xbf16>
    %c0_11 = arith.constant 0 : index
    %c0_12 = arith.constant 0 : index
    %9 = vector.load %arg2[%c0_11, %c0_12] : memref<32x32xbf16, #tpu.memory_space<vmem>>, vector<32x32xbf16>
    %cst = arith.constant dense<0.000000e+00> : vector<8x32xf32>
    %10 = tpu.matmul %8, %9, %cst {dimension_numbers = #tpu.dot_dimension_numbers<[1], [0], [0], [1], [0, 0, 1, 1], [], []>} : vector<8x32xbf16>, vector<32x32xbf16>, vector<8x32xf32> -> vector<8x32xf32>
    %11 = vector.broadcast %0 : vector<1x32xf32> to vector<8x32xf32>
    %12 = arith.addf %10, %11 : vector<8x32xf32>
    %cst_13 = arith.constant dense<0.000000e+00> : vector<8xf32>
    %13 = vector.multi_reduction <add>, %12, %cst_13 [1] : vector<8x32xf32> to vector<8xf32>
    %14 = vector.shape_cast %13 : vector<8xf32> to vector<8x1xf32>
    %cst_14 = arith.constant 3.200000e+01 : f32
    %15 = vector.broadcast %cst_14 : f32 to vector<8x1xf32>
    %16 = arith.divf %14, %15 : vector<8x1xf32>
    %17 = arith.mulf %12, %12 : vector<8x32xf32>
    %cst_15 = arith.constant dense<0.000000e+00> : vector<8xf32>
    %18 = vector.multi_reduction <add>, %17, %cst_15 [1] : vector<8x32xf32> to vector<8xf32>
    %19 = vector.shape_cast %18 : vector<8xf32> to vector<8x1xf32>
    %cst_16 = arith.constant 3.200000e+01 : f32
    %20 = vector.broadcast %cst_16 : f32 to vector<8x1xf32>
    %21 = arith.divf %19, %20 : vector<8x1xf32>
    %22 = arith.mulf %16, %16 : vector<8x1xf32>
    %23 = arith.subf %21, %22 : vector<8x1xf32>
    %24 = vector.broadcast %16 : vector<8x1xf32> to vector<8x32xf32>
    %25 = arith.subf %12, %24 : vector<8x32xf32>
    %cst_17 = arith.constant 9.99999974E-6 : f32
    %26 = vector.broadcast %cst_17 : f32 to vector<8x1xf32>
    %27 = arith.addf %23, %26 : vector<8x1xf32>
    %28 = math.rsqrt %27 : vector<8x1xf32>
    %29 = vector.broadcast %28 : vector<8x1xf32> to vector<8x32xf32>
    %30 = arith.mulf %25, %29 : vector<8x32xf32>
    %31 = vector.broadcast %1 : vector<1x32xf32> to vector<8x32xf32>
    %32 = arith.mulf %30, %31 : vector<8x32xf32>
    %33 = vector.broadcast %2 : vector<1x32xf32> to vector<8x32xf32>
    %34 = arith.addf %32, %33 : vector<8x32xf32>
    %35 = arith.negf %34 : vector<8x32xf32>
    %36 = math.exp %35 : vector<8x32xf32>
    %cst_18 = arith.constant 1.000000e+00 : f32
    %37 = vector.broadcast %cst_18 : f32 to vector<8x32xf32>
    %38 = arith.addf %37, %36 : vector<8x32xf32>
    %39 = arith.divf %37, %38 : vector<8x32xf32>
    %40 = arith.mulf %34, %39 : vector<8x32xf32>
    %41 = arith.truncf %40 : vector<8x32xf32> to vector<8x32xbf16>
    %c0_19 = arith.constant 0 : index
    %c0_20 = arith.constant 0 : index
    %42 = vector.load %arg3[%c0_19, %c0_20] : memref<32x32xbf16, #tpu.memory_space<vmem>>, vector<32x32xbf16>
    %cst_21 = arith.constant dense<0.000000e+00> : vector<8x32xf32>
    %43 = tpu.matmul %41, %42, %cst_21 {dimension_numbers = #tpu.dot_dimension_numbers<[1], [0], [0], [1], [0, 0, 1, 1], [], []>} : vector<8x32xbf16>, vector<32x32xbf16>, vector<8x32xf32> -> vector<8x32xf32>
    %44 = vector.broadcast %3 : vector<1x32xf32> to vector<8x32xf32>
    %45 = arith.addf %43, %44 : vector<8x32xf32>
    %cst_22 = arith.constant dense<0.000000e+00> : vector<8xf32>
    %46 = vector.multi_reduction <add>, %45, %cst_22 [1] : vector<8x32xf32> to vector<8xf32>
    %47 = vector.shape_cast %46 : vector<8xf32> to vector<8x1xf32>
    %cst_23 = arith.constant 3.200000e+01 : f32
    %48 = vector.broadcast %cst_23 : f32 to vector<8x1xf32>
    %49 = arith.divf %47, %48 : vector<8x1xf32>
    %50 = arith.mulf %45, %45 : vector<8x32xf32>
    %cst_24 = arith.constant dense<0.000000e+00> : vector<8xf32>
    %51 = vector.multi_reduction <add>, %50, %cst_24 [1] : vector<8x32xf32> to vector<8xf32>
    %52 = vector.shape_cast %51 : vector<8xf32> to vector<8x1xf32>
    %cst_25 = arith.constant 3.200000e+01 : f32
    %53 = vector.broadcast %cst_25 : f32 to vector<8x1xf32>
    %54 = arith.divf %52, %53 : vector<8x1xf32>
    %55 = arith.mulf %49, %49 : vector<8x1xf32>
    %56 = arith.subf %54, %55 : vector<8x1xf32>
    %57 = vector.broadcast %49 : vector<8x1xf32> to vector<8x32xf32>
    %58 = arith.subf %45, %57 : vector<8x32xf32>
    %cst_26 = arith.constant 9.99999974E-6 : f32
    %59 = vector.broadcast %cst_26 : f32 to vector<8x1xf32>
    %60 = arith.addf %56, %59 : vector<8x1xf32>
    %61 = math.rsqrt %60 : vector<8x1xf32>
    %62 = vector.broadcast %61 : vector<8x1xf32> to vector<8x32xf32>
    %63 = arith.mulf %58, %62 : vector<8x32xf32>
    %64 = vector.broadcast %4 : vector<1x32xf32> to vector<8x32xf32>
    %65 = arith.mulf %63, %64 : vector<8x32xf32>
    %66 = vector.broadcast %5 : vector<1x32xf32> to vector<8x32xf32>
    %67 = arith.addf %65, %66 : vector<8x32xf32>
    %68 = arith.negf %67 : vector<8x32xf32>
    %69 = math.exp %68 : vector<8x32xf32>
    %cst_27 = arith.constant 1.000000e+00 : f32
    %70 = vector.broadcast %cst_27 : f32 to vector<8x32xf32>
    %71 = arith.addf %70, %69 : vector<8x32xf32>
    %72 = arith.divf %70, %71 : vector<8x32xf32>
    %73 = arith.mulf %67, %72 : vector<8x32xf32>
    %74 = vector.broadcast %6 : vector<1x32xf32> to vector<8x32xf32>
    %75 = arith.mulf %73, %74 : vector<8x32xf32>
    %cst_28 = arith.constant dense<0.000000e+00> : vector<8xf32>
    %76 = vector.multi_reduction <add>, %75, %cst_28 [1] : vector<8x32xf32> to vector<8xf32>
    %77 = vector.shape_cast %76 : vector<8xf32> to vector<8x1xf32>
    %78 = vector.broadcast %7 : f32 to vector<8x1xf32>
    %79 = arith.addf %77, %78 : vector<8x1xf32>
    %c0_29 = arith.constant 0 : index
    %c0_30 = arith.constant 0 : index
    %80 = vector.load %arg6[%c0_29, %c0_30] : memref<8x1xf32, #tpu.memory_space<vmem>>, vector<8x1xf32>
    tpu.vector_store %arg6[%c0_29, %c0_30], %79 {strides = array<i32>} : memref<8x1xf32, #tpu.memory_space<vmem>>, vector<8x1xf32>,
    return
  }
  func.func @transform_0(%arg0: i32) -> (i32, i32) {
    %c0_i32 = arith.constant 0 : i32
    %c0_i32_0 = arith.constant 0 : i32
    return %arg0, %c0_i32 : i32, i32
  }
  func.func @transform_1(%arg0: i32) -> (i32, i32) {
    %c0_i32 = arith.constant 0 : i32
    %c0_i32_0 = arith.constant 0 : i32
    %c0_i32_1 = arith.constant 0 : i32
    return %c0_i32, %c0_i32_0 : i32, i32
  }
  func.func @transform_2(%arg0: i32) -> (i32, i32) {
    %c0_i32 = arith.constant 0 : i32
    %c0_i32_0 = arith.constant 0 : i32
    %c0_i32_1 = arith.constant 0 : i32
    return %c0_i32, %c0_i32_0 : i32, i32
  }
  func.func @transform_3(%arg0: i32) -> (i32, i32) {
    %c0_i32 = arith.constant 0 : i32
    %c0_i32_0 = arith.constant 0 : i32
    %c0_i32_1 = arith.constant 0 : i32
    return %c0_i32, %c0_i32_0 : i32, i32
  }
  func.func @transform_4(%arg0: i32) -> (i32, i32) {
    %c0_i32 = arith.constant 0 : i32
    %c0_i32_0 = arith.constant 0 : i32
    %c0_i32_1 = arith.constant 0 : i32
    return %c0_i32, %c0_i32_0 : i32, i32
  }
  func.func @transform_5(%arg0: i32) -> (i32, i32) {
    %c0_i32 = arith.constant 0 : i32
    %c0_i32_0 = arith.constant 0 : i32
    return %arg0, %c0_i32 : i32, i32
  }
}

</mosaic_0001>

<bundles_post_ra>
// kernel: tpu_custom_call.1
= control target key start
LH: loop header
LB: loop body
LE: loop exit
PB: predicated region body
PF: predicated region fallthrough
CT: control target
= control target key end

     0   :  { %11 = vsyncpa [#allocation4], 0  ;;  %s546_s0 = inlined_call_operand.vmem [shape: bf16[2,32], index: 0, kind: input, shape index: {}]   ;;  %s547_s1 = inlined_call_operand.hbm [shape: bf16[32,32], index: 1, kind: input, shape index: {}]   ;;  %s548_s2 = inlined_call_operand.hbm [shape: bf16[32,32], index: 2, kind: input, shape index: {}]   ;;  %s549_s3 = inlined_call_operand.hbm [shape: f32[8,32], index: 3, kind: input, shape index: {}]   ;;  %s550_s4 = inlined_call_operand.<no memory space> [shape: f32[1,1], index: 4, kind: input, shape index: {}]   ;;  %s551_s5 = inlined_call_operand.vmem [shape: f32[2,1], index: 5, kind: output, shape index: {}]  }
   0x1   :  { %12 = vsyncpa [#allocation6], 0  ;;  %s474_s18 = smov [#allocation5]   ;;  %s475_s20 = smov [#allocation3]  }
   0x2   :  { %s32_s19 = sshll.u32 %s474_s18, 4  ;;  %s20_s21 = sshll.u32 %s475_s20, 4  ;;  %s33_s19 = int_to_ptr.vmem [resolvable:$true] %s32_s19  ;;  %s21_s21 = int_to_ptr.vmem [resolvable:$true] %s20_s21 }
   0x3   :  { %s418_s22 = scalar_lea.vmem %s33_s19, 256  ;;  %p423_p1 = scmp.lt.s32.totalorder %s33_s19, %s33_s19 }
   0x4   :  { %p419_p0 = scmp.ne.s32.totalorder %s33_s19, %s418_s22  ;;  %p424_p2 = scmp.lt.s32.totalorder %s418_s22, %s418_s22 }
   0x6   :  { %p425_p3 = por %p424_p2, %p423_p1 }
   0x8   :  { %p426_p4 = pnand %p425_p3, %p419_p0 }
   0xa   :  { %429 = shalt.err (!%p426_p4)
}
   0xb   :  { %s476_s23 = smov 64   ;;  %s477_s24 = smov 4  }
   0xc   :  { %38 = dma.hbm_to_vmem [thread:$0]  %s548_s2, 256, %s33_s19, [#allocation6], %s476_s23, %s476_s23, %s477_s24  }
   0xd   :  { %s438_s27 = scalar_lea.vmem %s21_s21, 256  ;;  %p443_p6 = scmp.lt.s32.totalorder %s21_s21, %s21_s21 }
   0xe   :  { %p439_p5 = scmp.ne.s32.totalorder %s21_s21, %s438_s27  ;;  %p444_p7 = scmp.lt.s32.totalorder %s438_s27, %s438_s27 }
  0x10   :  { %p445_p8 = por %p444_p7, %p443_p6 }
  0x12   :  { %p446_p9 = pnand %p445_p8, %p439_p5 }
  0x14   :  { %449 = shalt.err (!%p446_p9)
}
  0x15   :  { %26 = dma.hbm_to_vmem [thread:$0]  %s547_s1, 256, %s21_s21, [#allocation4], %s476_s23, %s476_s23, %s477_s24  }
  0x16   :  { %s478_s30 = smov [#allocation7]  }
  0x17   :  { %s45_s6 = sshll.u32 %s478_s30, 4  ;;  %s46_s6 = int_to_ptr.vmem [resolvable:$true] %s45_s6 }
  0x18   :  { %s458_s7 = scalar_lea.vmem %s46_s6, 128  ;;  %p463_p11 = scmp.lt.s32.totalorder %s46_s6, %s46_s6 }
  0x19   :  { %p459_p10 = scmp.ne.s32.totalorder %s46_s6, %s458_s7  ;;  %p464_p12 = scmp.lt.s32.totalorder %s458_s7, %s458_s7 }
  0x1b   :  { %p465_p13 = por %p464_p12, %p463_p11 }
  0x1d   :  { %p466_p0 = pnand %p465_p13, %p459_p10 }
  0x1f   :  { %469 = shalt.err (!%p466_p0)
}
  0x20   :  { %48 = dma.hbm_to_vmem [thread:$0]  %s549_s3, 128, %s46_s6, [#allocation6]  }
  0x21   :  { %470 = dma.done.wait [#allocation4], 256  }
  0x22   :  { %471 = vsyncadd [#allocation4], 4294967040 }
  0x23   :  { %472 = dma.done.wait [#allocation6], 384  }
  0x24   :  { %473 = vsyncadd [#allocation6], 4294966912  ;;  %v90_v0 = vlaneseq  ;;  %v479_v1 = vmov 0.0   ;;  %vm480_vm0 = vmmov 0   ;;  %v481_v2 = vmov 1966171168  }
  0x25   :  { %370 = vmatprep.subr.bf16.mxu0 %v479_v1  ;;  %374 = vmatprep.mubr.msk.bf16.mxu0 %vm480_vm0, %v479_v1  ;;  %v88_v3 = vunpack.c.l.s4 %v481_v2  ;;  %v394_v6 = vld [vmem:[#allocation3 + $0x8] sm:$0xff]   ;;  %v395_v7 = vld [vmem:[#allocation3] sm:$0xff]   ;;  %vm121_vm1 = vcmask 261120   ;;  %v396_v28 = vld [vmem:[#allocation5 + $0x8] sm:$0xff]   ;;  %vm304_vm2 = vcmask 7168  }
  0x26   :  { %378 = vmatprep.subr.bf16.mxu1 %v479_v1  ;;  %382 = vmatprep.mubr.msk.bf16.mxu1 %vm480_vm0, %v479_v1  ;;  %v91_v5 = vshrl.u32 %v90_v0, 7  ;;  %v69_v9 = vld [vmem:[%s546_s0] sm:$0x1]  ;;  %v70_v10 = vld [vmem:[%s546_s0 + $0x1] sm:$0x1]  ;;  %v397_v29 = vld [vmem:[#allocation5] sm:$0xff]  }
  0x27   :  { %v89_v4 = vunpack.c.0.s8 %v88_v3  ;;  %371 = vmatpush3.bf16.msra.mxu0 %v394_v6  ;;  %v71_v11 = vld [vmem:[%s546_s0 + $0x2] sm:$0x1]  ;;  %v72_v12 = vld [vmem:[%s546_s0 + $0x3] sm:$0x1]  ;;  %v85_v13 = vcombine.low %v69_v9, %v70_v10  ;;  %v349_v19 = vld [vmem:[#allocation7] ss:$0 sm:$0xff]  ;;  %379 = vmatpush3.bf16.msra.mxu1 %v396_v28 }
  0x28   :  { %372 = vmatprep.subr.bf16.mxu0 %v479_v1  ;;  %v86_v14 = vcombine.low %v71_v11, %v72_v12  ;;  %380 = vmatprep.subr.bf16.mxu1 %v479_v1  ;;  %v353_v39 = vld [vmem:[#allocation7 + $0x1] ss:$0 sm:$0xff]  ;;  %v354_v41 = vld [vmem:[#allocation7 + $0x2] ss:$0 sm:$0xff]  ;;  %v356_v50 = vld [vmem:[#allocation7 + $0x3] ss:$0 sm:$0xff] }
  0x29   :  { %v92_v8 = vsub.s32 %v89_v4, %v91_v5  ;;  %v360_v4 = vld [vmem:[#allocation7 + $0x4] ss:$0 sm:$0xff]  ;;  %v361_v6 = vld [vmem:[#allocation7 + $0x5] ss:$0 sm:$0xff] }
  0x2b   :  { %v93_v15 = vrot.slane %v85_v13, %v92_v8  ;;  %373 = vmatpush3.bf16.msra.mxu0 %v395_v7  ;;  %v100_v16 = vrot.slane %v86_v14, %v92_v8  ;;  %381 = vmatpush3.bf16.msra.mxu1 %v397_v29  ;;  %v363_v13 = vld [vmem:[#allocation7 + $0x6] ss:$0 sm:$0xff] }
  0x2d   :  { %v101_v17 = vcombine.low %v93_v15, %v100_v16 }
  0x2f   :  { %v108_v18 = vrot.slane %v101_v17, %v92_v8  ;;  %v302_v17 = vstv %s550_s4 }
  0x31   :  { %375 = vmatmul.mubr.msk.bf16.vlgmr.msra.gmra.mxu0 %vm121_vm1, %v108_v18 }
  0xf1   :  { %v159_v20 = vpop.f32.mrf.mxu0 }
  0xf2   :  { %v160_v21 = vadd.f32 %v349_v19, %v159_v20 }
  0xf3   :  { %v376_v22 = vpop.f32.mrf.mxu0 }
  0xf4   :  { %v165_v23 = vsel %vm121_vm1, %v160_v21, 0.0  ;;  %v170_v24 = vmul.f32 %v160_v21, %v160_v21 }
  0xf5   :  { %v162_v25 = vpop.f32.mrf.mxu0  ;;  %166 = vadd.xlane.f32.xlu0 %v165_v23 }
  0xf6   :  { %v171_v27 = vsel %vm121_vm1, %v170_v24, 0.0 }
  0xf7   :  { %v377_v26 = vpop.f32.mrf.mxu0 }
  0xf9   :  { %172 = vadd.xlane.f32.xlu0 %v171_v27 }
 0x17e   :  { %v167_v30 = vpop.xlane.xlu0 %166 }
 0x17f   :  { %v169_v31 = vmul.f32 0.03125, %v167_v30 }
 0x181   :  { %v175_v33 = vmul.f32 %v169_v31, %v169_v31  ;;  %v177_v37 = vsub.f32 %v160_v21, %v169_v31 }
 0x182   :  { %v173_v32 = vpop.xlane.xlu0 %172 }
 0x183   :  { %v174_v34 = vmul.f32 0.03125, %v173_v32 }
 0x185   :  { %v176_v35 = vsub.f32 %v174_v34, %v175_v33 }
 0x187   :  { %v178_v36 = vadd.f32 1e-05, %v176_v35 }
 0x189   :  { %398 = vrsqrt.f32 %v178_v36 }
 0x196   :  { %v399_v38 = vpop.eup %398 }
 0x197   :  { %v180_v40 = vmul.f32 %v399_v38, %v177_v37 }
 0x199   :  { %v185_v42 = vmul.f32 %v353_v39, %v180_v40 }
 0x19b   :  { %v190_v43 = vadd.f32 %v354_v41, %v185_v42 }
 0x19d   :  { %v355_v44 = vmul.f32 -1.442695, %v190_v43 }
 0x19f   :  { %400 = vpow2.f32 %v355_v44 }
 0x1ac   :  { %v401_v45 = vpop.eup %400 }
 0x1ad   :  { %v194_v46 = vadd.f32 1.0, %v401_v45 }
 0x1af   :  { %402 = vrcp.f32 %v194_v46 }
 0x1bc   :  { %v403_v47 = vpop.eup %402 }
 0x1bd   :  { %v197_v48 = vmul.f32 %v403_v47, %v190_v43 }
 0x1bf   :  { %v198_v49 = vpack.c.bf16 %v197_v48, %v197_v48 }
 0x1c1   :  { %383 = vmatmul.mubr.msk.bf16.vlgmr.msra.gmra.mxu1 %vm121_vm1, %v198_v49 }
 0x281   :  { %v256_v51 = vpop.f32.mrf.mxu1 }
 0x282   :  { %v257_v52 = vadd.f32 %v356_v50, %v256_v51 }
 0x283   :  { %v384_v53 = vpop.f32.mrf.mxu1 }
 0x284   :  { %v262_v54 = vsel %vm121_vm1, %v257_v52, 0.0  ;;  %v266_v55 = vmul.f32 %v257_v52, %v257_v52 }
 0x285   :  { %263 = vadd.xlane.f32.xlu1 %v262_v54  ;;  %v259_v56 = vpop.f32.mrf.mxu1 }
 0x286   :  { %v267_v58 = vsel %vm121_vm1, %v266_v55, 0.0 }
 0x287   :  { %v385_v57 = vpop.f32.mrf.mxu1 }
 0x289   :  { %268 = vadd.xlane.f32.xlu1 %v267_v58 }
 0x30e   :  { %v264_v59 = vpop.xlane.xlu1 %263 }
 0x30f   :  { %v265_v60 = vmul.f32 0.03125, %v264_v59 }
 0x311   :  { %v271_v62 = vmul.f32 %v265_v60, %v265_v60  ;;  %v273_v2 = vsub.f32 %v257_v52, %v265_v60 }
 0x312   :  { %v269_v61 = vpop.xlane.xlu1 %268 }
 0x313   :  { %v270_v63 = vmul.f32 0.03125, %v269_v61 }
 0x315   :  { %v272_v0 = vsub.f32 %v270_v63, %v271_v62 }
 0x317   :  { %v274_v1 = vadd.f32 1e-05, %v272_v0 }
 0x319   :  { %404 = vrsqrt.f32 %v274_v1 }
 0x326   :  { %v405_v3 = vpop.eup %404 }
 0x327   :  { %v276_v5 = vmul.f32 %v405_v3, %v273_v2 }
 0x329   :  { %v281_v7 = vmul.f32 %v360_v4, %v276_v5 }
 0x32b   :  { %v286_v8 = vadd.f32 %v361_v6, %v281_v7 }
 0x32d   :  { %v362_v9 = vmul.f32 -1.442695, %v286_v8 }
 0x32f   :  { %406 = vpow2.f32 %v362_v9 }
 0x33c   :  { %v407_v10 = vpop.eup %406 }
 0x33d   :  { %v290_v11 = vadd.f32 1.0, %v407_v10 }
 0x33f   :  { %408 = vrcp.f32 %v290_v11 }
 0x34c   :  { %v409_v12 = vpop.eup %408 }
 0x34d   :  { %v293_v14 = vmul.f32 %v409_v12, %v286_v8 }
 0x34f   :  { %v298_v15 = vmul.f32 %v363_v13, %v293_v14 }
 0x351   :  { %v299_v16 = vsel %vm121_vm1, %v298_v15, 0.0 }
 0x352   :  { %300 = vadd.xlane.f32.xlu0 %v299_v16 }
 0x3db   :  { %v301_v18 = vpop.xlane.xlu0 %300 }
 0x3dc   :  { %v303_v19 = vadd.f32 %v302_v17, %v301_v18 }
 0x3de   :  { %305 = vst.msk [vmem:[#allocation8] sm:$0xff] %vm304_vm2, %v303_v19 }
 0x3e5   :  { %v324_v20 = vld [vmem:[#allocation8] sm:$0x3] }
 0x3e6   :  { %325 = vst [vmem:[%s551_s5] sm:$0x3] %v324_v20 }
 0x3e7   :  { %343 = vsyncpa [#allocation4], 1 }
 0x3e8   :  { %344 = vsyncpa [#allocation6], 1 }

</bundles_post_ra>
